<compile_context>
chip_gen: v5e
topology: v5e:2x2
jax: 0.10.0
libtpu: 0.0.40
codegen_flags: <defaults>
</compile_context>

<pallas_src>
import jax
import jax.numpy as jnp
from jax.experimental import pallas as pl
from jax.experimental.pallas import tpu as pltpu

LANE = 128


def _round_up(x, m):
    return (x + m - 1) // m * m


# ---------------- Layer 1: H1 = relu(A_hat @ X @ W1 + b1) ----------------
def gcn_layer1_kernel(a_ref, x_ref, w_ref, b_ref, o_ref, acc_ref):
    k = pl.program_id(1)

    @pl.when(k == 0)
    def _init():
        acc_ref[...] = jnp.zeros_like(acc_ref)

    # Aggregate first (narrow nfeat width): acc[(TM,nfeat)] += A[i,k] @ X[k]
    acc_ref[...] += jnp.dot(a_ref[...], x_ref[...],
                            preferred_element_type=jnp.float32)

    @pl.when(k == pl.num_programs(1) - 1)
    def _finalize():
        agg = acc_ref[...].astype(jnp.bfloat16)
        h = jnp.dot(agg, w_ref[...],
                    preferred_element_type=jnp.float32) + b_ref[...]
        o_ref[...] = jnp.maximum(h, 0.0).astype(o_ref.dtype)


# ------ Layer 2 + Linear fused: out = relu(A_hat @ (H1 @ W2) + b2) @ W3 + b3 ------
def gcn_layer2_linear_kernel(a_ref, h_ref, w2_ref, b2_ref, w3_ref, b3_ref,
                             o_ref, acc_ref):
    k = pl.program_id(1)

    @pl.when(k == 0)
    def _init():
        acc_ref[...] = jnp.zeros_like(acc_ref)

    # Project first (narrow nhid2 width), then aggregate.
    hw = jnp.dot(h_ref[...], w2_ref[...],
                 preferred_element_type=jnp.float32).astype(jnp.bfloat16)
    acc_ref[...] += jnp.dot(a_ref[...], hw, preferred_element_type=jnp.float32)

    @pl.when(k == pl.num_programs(1) - 1)
    def _finalize():
        h2 = jnp.maximum(acc_ref[...] + b2_ref[...], 0.0).astype(jnp.bfloat16)
        out = jnp.dot(h2, w3_ref[...],
                      preferred_element_type=jnp.float32) + b3_ref[...]
        o_ref[...] = out


def _gcn_layer1(a_p, x_p, w1p, b1p, *, tile):
    n_pad = a_p.shape[0]
    nfeat = x_p.shape[1]
    h1p = w1p.shape[1]
    grid = (n_pad // tile, n_pad // tile)
    return pl.pallas_call(
        gcn_layer1_kernel,
        out_shape=jax.ShapeDtypeStruct((n_pad, h1p), jnp.bfloat16),
        grid_spec=pltpu.PrefetchScalarGridSpec(
            num_scalar_prefetch=0,
            grid=grid,
            in_specs=[
                pl.BlockSpec((tile, tile), lambda i, k: (i, k)),
                pl.BlockSpec((tile, nfeat), lambda i, k: (k, 0)),
                pl.BlockSpec((nfeat, h1p), lambda i, k: (0, 0)),
                pl.BlockSpec((1, h1p), lambda i, k: (0, 0)),
            ],
            out_specs=pl.BlockSpec((tile, h1p), lambda i, k: (i, 0)),
            scratch_shapes=[pltpu.VMEM((tile, nfeat), jnp.float32)],
        ),
        compiler_params=pltpu.CompilerParams(
            dimension_semantics=("parallel", "arbitrary")),
    )(a_p, x_p, w1p, b1p)


def _gcn_layer2_linear(a_p, h1_p, w2p, b2, w3p, b3p, *, tile):
    n_pad = a_p.shape[0]
    h1p = h1_p.shape[1]
    nhid2 = w2p.shape[1]
    outp = w3p.shape[1]
    grid = (n_pad // tile, n_pad // tile)
    return pl.pallas_call(
        gcn_layer2_linear_kernel,
        out_shape=jax.ShapeDtypeStruct((n_pad, outp), jnp.float32),
        grid_spec=pltpu.PrefetchScalarGridSpec(
            num_scalar_prefetch=0,
            grid=grid,
            in_specs=[
                pl.BlockSpec((tile, tile), lambda i, k: (i, k)),
                pl.BlockSpec((tile, h1p), lambda i, k: (k, 0)),
                pl.BlockSpec((h1p, nhid2), lambda i, k: (0, 0)),
                pl.BlockSpec((1, nhid2), lambda i, k: (0, 0)),
                pl.BlockSpec((nhid2, outp), lambda i, k: (0, 0)),
                pl.BlockSpec((1, outp), lambda i, k: (0, 0)),
            ],
            out_specs=pl.BlockSpec((tile, outp), lambda i, k: (i, 0)),
            scratch_shapes=[pltpu.VMEM((tile, nhid2), jnp.float32)],
        ),
        compiler_params=pltpu.CompilerParams(
            dimension_semantics=("parallel", "arbitrary")),
    )(a_p, h1_p, w2p, b2, w3p, b3p)


def gcn_forward(a_hat, x, params, *, tile=128):
    """params = (w1 [nfeat,nhid1], b1 [1,nhid1], w2 [nhid1,nhid2], b2 [1,nhid2],
                 w3 [nhid2,nclass], b3 [1,nclass])"""
    w1, b1, w2, b2, w3, b3 = params
    n = a_hat.shape[0]
    nfeat = x.shape[1]
    nhid1 = w1.shape[1]
    nhid2 = w2.shape[1]
    nclass = w3.shape[1]

    n_pad = _round_up(n, tile)
    h1p = _round_up(nhid1, LANE)      # lane-dense H1 store
    outp = _round_up(nclass, LANE)    # lane-dense final store

    # Zero-pad graph / features to the tile grid; padded rows/cols of A_hat are
    # zero so they never contaminate real rows.
    a_p = jnp.zeros((n_pad, n_pad), jnp.float32).at[:n, :n].set(a_hat)
    x_p = jnp.zeros((n_pad, nfeat), jnp.float32).at[:n, :].set(x)

    # bf16 for the big streamed operands + weights; f32 biases; f32 MXU accum.
    a_p = a_p.astype(jnp.bfloat16)
    x_p = x_p.astype(jnp.bfloat16)

    w1p = jnp.zeros((nfeat, h1p), jnp.float32).at[:, :nhid1].set(w1).astype(jnp.bfloat16)
    b1p = jnp.zeros((1, h1p), jnp.float32).at[:, :nhid1].set(b1)
    w2p = jnp.zeros((h1p, nhid2), jnp.float32).at[:nhid1, :].set(w2).astype(jnp.bfloat16)
    b2f = b2.astype(jnp.float32)
    w3p = jnp.zeros((nhid2, outp), jnp.float32).at[:, :nclass].set(w3).astype(jnp.bfloat16)
    b3p = jnp.zeros((1, outp), jnp.float32).at[:, :nclass].set(b3)

    h1_p = _gcn_layer1(a_p, x_p, w1p, b1p, tile=tile)
    # F.dropout(training=False) -> identity (eval mode)
    out_p = _gcn_layer2_linear(a_p, h1_p, w2p, b2f, w3p, b3p, tile=tile)
    return out_p[:n, :nclass]


def build_normalized_adj(key, n):
    # deterministic random symmetric graph + self loops, norm='both'
    a = (jax.random.uniform(key, (n, n)) < 0.1).astype(jnp.float32)
    a = jnp.maximum(a, a.T)                             # symmetrize
    a = jnp.maximum(a, jnp.eye(n, dtype=jnp.float32))   # dgl.add_self_loop
    deg = jnp.sum(a, axis=1)
    d_inv_sqrt = 1.0 / jnp.sqrt(deg)
    return d_inv_sqrt[:, None] * a * d_inv_sqrt[None, :]


if __name__ == "__main__":
    N, nfeat, nhid1, nhid2, nclass = 256, 16, 32, 16, 8
    TILE = 128  # modest tiles: safe on v5e's 16 MiB scoped VMEM, scales up on v6e/v7x

    key = jax.random.PRNGKey(0)
    k_adj, k_x, k1, k2, k3, kb1, kb2, kb3 = jax.random.split(key, 8)

    a_hat = build_normalized_adj(k_adj, N)
    x = jax.random.normal(k_x, (N, nfeat), dtype=jnp.float32)

    # GraphConv weight [in, out]; nn.Linear weight [out, in] (pass transposed).
    w1 = jax.random.normal(k1, (nfeat, nhid1), dtype=jnp.float32) * 0.1
    b1 = jax.random.normal(kb1, (1, nhid1), dtype=jnp.float32) * 0.05
    w2 = jax.random.normal(k2, (nhid1, nhid2), dtype=jnp.float32) * 0.1
    b2 = jax.random.normal(kb2, (1, nhid2), dtype=jnp.float32) * 0.05
    w3_linear = jax.random.normal(k3, (nclass, nhid2), dtype=jnp.float32) * 0.1
    b3 = jax.random.normal(kb3, (1, nclass), dtype=jnp.float32) * 0.05
    w3 = w3_linear.T

    params = (w1, b1, w2, b2, w3, b3)

    out = gcn_forward(a_hat, x, params, tile=TILE)
    out = jax.block_until_ready(out)

    # Pure-JAX reference (f32 math on bf16-rounded operands, since the kernel
    # streams A_hat / activations / weights as bf16 with f32 accumulation).
    def r(v):
        return v.astype(jnp.bfloat16).astype(jnp.float32)

    a_r, x_r = r(a_hat), r(x)
    h1_ref = jnp.maximum(a_r @ x_r @ r(w1) + b1, 0.0)
    h2_ref = jnp.maximum(a_r @ h1_ref @ r(w2) + b2, 0.0)
    out_ref = h2_ref @ r(w3) + b3

    assert out.shape == (N, nclass)
    assert jnp.allclose(out, out_ref, atol=2e-2, rtol=2e-2), (
        float(jnp.max(jnp.abs(out - out_ref))))

    print("KERNEL_OK")
</pallas_src>

<mosaic_0001>
module attributes {stable_mosaic.version = 11 : i64} {
  func.func @gcn_layer1_kernel(%arg0: i32, %arg1: i32, %arg2: memref<128x128xbf16, #tpu.memory_space<vmem>>, %arg3: memref<128x16xbf16, #tpu.memory_space<vmem>>, %arg4: memref<16x128xbf16, #tpu.memory_space<vmem>>, %arg5: memref<1x128xf32, #tpu.memory_space<vmem>>, %arg6: memref<128x128xbf16, #tpu.memory_space<vmem>>, %arg7: memref<128x16xf32, #tpu.memory_space<vmem>>) attributes {dimension_semantics = [#tpu.dimension_semantics<parallel>, #tpu.dimension_semantics<arbitrary>], iteration_bounds = array<i64: 2, 2>, scalar_prefetch = 0 : i64, scratch_operands = 1 : i64, tpu.core_type = #tpu.core_type<tc>, window_params = [{transform_indices = @transform_0, window_bounds = array<i64: 128, 128>}, {transform_indices = @transform_1, window_bounds = array<i64: 128, 16>}, {pipeline_mode = #tpu.pipeline_mode<synchronous>, transform_indices = @transform_2, window_bounds = array<i64: 16, 128>}, {pipeline_mode = #tpu.pipeline_mode<synchronous>, transform_indices = @transform_3, window_bounds = array<i64: 1, 128>}, {transform_indices = @transform_4, window_bounds = array<i64: 128, 128>}]} {
    %c0_i32 = arith.constant 0 : i32
    %0 = arith.cmpi eq, %arg1, %c0_i32 : i32
    %1 = arith.extui %0 : i1 to i32
    %c0_i32_0 = arith.constant 0 : i32
    %2 = arith.cmpi ne, %1, %c0_i32_0 : i32
    scf.if %2 {
      %cst_9 = arith.constant 0.000000e+00 : f32
      %12 = vector.broadcast %cst_9 : f32 to vector<128x16xf32>
      %c0_10 = arith.constant 0 : index
      %c0_11 = arith.constant 0 : index
      %13 = vector.load %arg7[%c0_10, %c0_11] : memref<128x16xf32, #tpu.memory_space<vmem>>, vector<128x16xf32>
      tpu.vector_store %arg7[%c0_10, %c0_11], %12 {strides = array<i32>} : memref<128x16xf32, #tpu.memory_space<vmem>>, vector<128x16xf32>,
    } else {
    }
    %c0 = arith.constant 0 : index
    %c0_1 = arith.constant 0 : index
    %3 = vector.load %arg7[%c0, %c0_1] : memref<128x16xf32, #tpu.memory_space<vmem>>, vector<128x16xf32>
    %c0_2 = arith.constant 0 : index
    %c0_3 = arith.constant 0 : index
    %4 = vector.load %arg2[%c0_2, %c0_3] : memref<128x128xbf16, #tpu.memory_space<vmem>>, vector<128x128xbf16>
    %c0_4 = arith.constant 0 : index
    %c0_5 = arith.constant 0 : index
    %5 = vector.load %arg3[%c0_4, %c0_5] : memref<128x16xbf16, #tpu.memory_space<vmem>>, vector<128x16xbf16>
    %cst = arith.constant dense<0.000000e+00> : vector<128x16xf32>
    %6 = tpu.matmul %4, %5, %cst {dimension_numbers = #tpu.dot_dimension_numbers<[1], [0], [0], [1], [0, 0, 1, 1], [], []>} : vector<128x128xbf16>, vector<128x16xbf16>, vector<128x16xf32> -> vector<128x16xf32>
    %7 = arith.addf %3, %6 : vector<128x16xf32>
    %c0_6 = arith.constant 0 : index
    %c0_7 = arith.constant 0 : index
    %8 = vector.load %arg7[%c0_6, %c0_7] : memref<128x16xf32, #tpu.memory_space<vmem>>, vector<128x16xf32>
    tpu.vector_store %arg7[%c0_6, %c0_7], %7 {strides = array<i32>} : memref<128x16xf32, #tpu.memory_space<vmem>>, vector<128x16xf32>,
    %c1_i32 = arith.constant 1 : i32
    %9 = arith.cmpi eq, %arg1, %c1_i32 : i32
    %10 = arith.extui %9 : i1 to i32
    %c0_i32_8 = arith.constant 0 : i32
    %11 = arith.cmpi ne, %10, %c0_i32_8 : i32
    scf.if %11 {
      %c0_9 = arith.constant 0 : index
      %c0_10 = arith.constant 0 : index
      %12 = vector.load %arg7[%c0_9, %c0_10] : memref<128x16xf32, #tpu.memory_space<vmem>>, vector<128x16xf32>
      %13 = arith.truncf %12 : vector<128x16xf32> to vector<128x16xbf16>
      %c0_11 = arith.constant 0 : index
      %c0_12 = arith.constant 0 : index
      %14 = vector.load %arg4[%c0_11, %c0_12] : memref<16x128xbf16, #tpu.memory_space<vmem>>, vector<16x128xbf16>
      %cst_13 = arith.constant dense<0.000000e+00> : vector<128x128xf32>
      %15 = tpu.matmul %13, %14, %cst_13 {dimension_numbers = #tpu.dot_dimension_numbers<[1], [0], [0], [1], [0, 0, 1, 1], [], []>} : vector<128x16xbf16>, vector<16x128xbf16>, vector<128x128xf32> -> vector<128x128xf32>
      %c0_14 = arith.constant 0 : index
      %c0_15 = arith.constant 0 : index
      %16 = vector.load %arg5[%c0_14, %c0_15] : memref<1x128xf32, #tpu.memory_space<vmem>>, vector<1x128xf32>
      %17 = vector.broadcast %16 : vector<1x128xf32> to vector<128x128xf32>
      %18 = arith.addf %15, %17 : vector<128x128xf32>
      %cst_16 = arith.constant 0.000000e+00 : f32
      %19 = vector.broadcast %cst_16 : f32 to vector<128x128xf32>
      %20 = arith.maximumf %18, %19 : vector<128x128xf32>
      %21 = arith.truncf %20 : vector<128x128xf32> to vector<128x128xbf16>
      %c0_17 = arith.constant 0 : index
      %c0_18 = arith.constant 0 : index
      %22 = vector.load %arg6[%c0_17, %c0_18] : memref<128x128xbf16, #tpu.memory_space<vmem>>, vector<128x128xbf16>
      tpu.vector_store %arg6[%c0_17, %c0_18], %21 {strides = array<i32>} : memref<128x128xbf16, #tpu.memory_space<vmem>>, vector<128x128xbf16>,
    } else {
    }
    return
  }
  func.func @transform_0(%arg0: i32, %arg1: i32) -> (i32, i32) {
    %c0_i32 = arith.constant 0 : i32
    return %arg0, %arg1 : i32, i32
  }
  func.func @transform_1(%arg0: i32, %arg1: i32) -> (i32, i32) {
    %c0_i32 = arith.constant 0 : i32
    %c0_i32_0 = arith.constant 0 : i32
    return %arg1, %c0_i32 : i32, i32
  }
  func.func @transform_2(%arg0: i32, %arg1: i32) -> (i32, i32) {
    %c0_i32 = arith.constant 0 : i32
    %c0_i32_0 = arith.constant 0 : i32
    %c0_i32_1 = arith.constant 0 : i32
    return %c0_i32, %c0_i32_0 : i32, i32
  }
  func.func @transform_3(%arg0: i32, %arg1: i32) -> (i32, i32) {
    %c0_i32 = arith.constant 0 : i32
    %c0_i32_0 = arith.constant 0 : i32
    %c0_i32_1 = arith.constant 0 : i32
    return %c0_i32, %c0_i32_0 : i32, i32
  }
  func.func @transform_4(%arg0: i32, %arg1: i32) -> (i32, i32) {
    %c0_i32 = arith.constant 0 : i32
    %c0_i32_0 = arith.constant 0 : i32
    return %arg0, %c0_i32 : i32, i32
  }
}

</mosaic_0001>

<bundles_post_ra>
// kernel: tpu_custom_call.1
= control target key start
LH: loop header
LB: loop body
LE: loop exit
PB: predicated region body
PF: predicated region fallthrough
CT: control target
= control target key end

     0   :  { %9 = vsyncpa [#allocation4], 0  ;;  %s1517_s0 = inlined_call_operand.hbm [shape: bf16[256,256], index: 0, kind: input, shape index: {}]   ;;  %s1518_s1 = inlined_call_operand.vmem [shape: bf16[256,16], index: 1, kind: input, shape index: {}]   ;;  %s1519_s2 = inlined_call_operand.vmem [shape: bf16[16,128], index: 2, kind: input, shape index: {}]   ;;  %s1520_s3 = inlined_call_operand.vmem [shape: f32[1,128], index: 3, kind: input, shape index: {}]   ;;  %s1521_s4 = inlined_call_operand.hbm [shape: bf16[256,128], index: 4, kind: output, shape index: {}]  }
   0x1   :  { %11 = vsyncpa [#allocation4 + $0x1], 0 }
   0x2   :  { %12 = vsyncpa [#allocation5], 0 }
   0x3   :  { %14 = vsyncpa [#allocation5 + $0x1], 0  ;;  %s1264_s15 = smov 0   ;;  %s1266_s16 = smov 0  }
   0x4   :  { %s1268_s17 = smov 0   ;;  %s1270_s18 = smov 0  }
   0x5   :  { %s1272_s19 = smov 0   ;;  %s1274_s20 = smov 0  }
   0x6   :  { %s1276_s21 = smov 0   ;;  %s1278_s22 = smov 0  }
   0x7   :  { %s1280_s23 = smov 0   ;;  %s1282_s24 = smov 0  }
   0x8   :  { %s1284_s25 = smov 0  }
   0x9 LB: > { %1527 = sst [smem:[#allocation9_spill]] %s1199_s17  ;;  %s781_s26 = sadd.s32 4294967295, %s1231_s25   ;;  %s1231_s25 = sphi %s1284_s25, %s20_s25   ;;  %s1227_s24 = sphi %s1282_s24, %s1552_s24   ;;  %s1223_s23 = sphi %s1280_s23, %s1551_s23   ;;  %s1219_s22 = sphi %s1278_s22, %s1550_s22   ;;  %s1215_s21 = sphi %s1276_s21, %s1549_s21   ;;  %s1211_s20 = sphi %s1274_s20, %s1542_s20   ;;  %s1207_s19 = sphi %s1272_s19, %s1548_s19   ;;  %s1203_s18 = sphi %s1270_s18, %s1547_s18   ;;  %s1199_s17 = sphi %s1268_s17, %s1540_s17   ;;  %s1195_s16 = sphi %s1266_s16, %s1546_s16   ;;  %s1191_s15 = sphi %s1264_s15, %s1545_s15  }
   0xa   : > { %1528 = sst [smem:[#allocation10_spill]] %s1211_s20  ;;  %s782_s27 = sadd.s32 4294967294, %s1231_s25  }
   0xb   : > { %s29_s28 = sadd.s32 1, %s1223_s23  ;;  %s32_s29 = sadd.s32 1, %s1227_s24 }
   0xc   : > { %p30_p0 = scmp.ge.s32.totalorder %s29_s28, 2  ;;  %s41_s30 = sadd.s32 1, %s1211_s20 }
   0xd   : > { %p48_p1 = scmp.ne.s32.totalorder %s1211_s20, %s1207_s19  ;;  %p49_p2 = scmp.eq.s32.totalorder %s1231_s25, 0 }
   0xe   : > { %s1554_s28 = smov (%p30_p0, %s29_s28), 0  ;;  %s1556_s29 = smov (!%p30_p0, %s32_s29), %s1227_s24 }
   0xf   : > { %1529 = sst [smem:[#allocation11_spill]] %s1554_s28  ;;  %s37_s5 = ssub.s32 %s1223_s23, %s1554_s28 }
  0x10   : > { %p1330_p3 = por %p49_p2, %p48_p1  ;;  %p34_p4 = scmp.ge.s32.totalorder %s1556_s29, 2 }
  0x11   : > { %p54_p5 = scmp.ne.s32.totalorder %s1207_s19, %s1203_s18  ;;  %p55_p6 = scmp.eq.s32.totalorder %s781_s26, 0 }
  0x12   : > { %s135_s7 = sadd.s32 1, %s1199_s17  ;;  %s1558_s29 = smov (%p34_p4, %s1556_s29), 0 }
  0x13   : > { %1531 = sst [smem:[#allocation12_spill]] %s1558_s29  ;;  %p1338_p7 = por %p55_p6, %p54_p5 }
  0x14   : > { %p145_p8 = scmp.ne.s32.totalorder %s1199_s17, %s1195_s16  ;;  %s36_s9 = ssub.s32 %s1227_s24, %s1558_s29 }
  0x15   : > { %p146_p9 = scmp.eq.s32.totalorder %s781_s26, 3  ;;  %s38_s10 = sor.u32 %s37_s5, %s36_s9 }
  0x16   : > { %p133_p10 = scmp.eq.s32.totalorder %s36_s9, 0  ;;  %p39_p11 = scmp.eq.s32.totalorder %s38_s10, 0 }
  0x17   : > { %p1346_p12 = por %p146_p9, %p145_p8  ;;  %p151_p13 = scmp.ne.s32.totalorder %s1195_s16, %s1191_s15 }
  0x18   : > { %s1351_s12 = scalar_select %p133_p10, %s1199_s17, %s135_s7  }
  0x19   : > { %s1354_s13 = scalar_select %p39_p11, %s1211_s20, %s41_s30  }
  0x1a   : > { %1534 = sst [smem:[#allocation13_spill]] %s1351_s12  ;;  %p152_p0 = scmp.eq.s32.totalorder %s782_s27, 3 }
  0x1b   : > { %1535 = sst [smem:[#allocation14_spill]] %s1354_s13  ;;  %p982_p1 = scmp.lt.s32.totalorder %s1231_s25, 4 }
  0x1c   : > { %p1359_p2 = por %p152_p0, %p151_p13  ;;  %s178_s18 = sand.u32 1, %s1211_s20  }
  0x1d   : > { %s785_s26 = sshll.u32 %s178_s18, 6  ;;  %s877_s5 = sshll.u32 %s1227_s24, 5 }
  0x1e   : > { %s1536_s14 = scalar_select %p1359_p2, 1, 0 }
  0x1f   : > { %s187_s9 = sadd.s32 %s1223_s23, %s877_s5  ;;  %s182_s10 = scalar_lea.vmem [#allocation3], %s785_s26 }
  0x20   : > { %1537 = sst [smem:[#allocation15_spill]] %s1536_s14  ;;  %s192_s29 = sshll.u32 %s182_s10, 4  ;;  %s193_s29 = int_to_ptr.vmem [resolvable:$true] %s192_s29 }
  0x21   : > { %s788_s28 = sshll.u32 %s187_s9, 2  ;;  %p975_p4 = pnand %p982_p1, %p1330_p3 }
  0x22   : > { %s189_s13 = scalar_lea.hbm %s1517_s0, %s788_s28  ;;  %s179_s12 = scalar_lea.sflag [#allocation4], %s178_s18 }
  0x23   : > { %s190_s27 = sshll.u32 %s189_s13, 4  ;;  %s1233_s17 = smov 128   ;;  %s191_s27 = int_to_ptr.hbm [resolvable:$true] %s190_s27 }
  0x24   : > { %s1234_s20 = smov 64   ;;  %s1235_s14 = smov 4  }
  0x25   : > { %977 = dma.hbm_to_vmem [thread:$0]  (!%p975_p4), %s191_s27, 1024, %s193_s29, %s179_s12, %s1233_s17, %s1234_s20, %s1235_s14  }
  0x26   : > { %p789_p5 = scmp.ge.s32.totalorder %s1231_s25, 1  ;;  %p209_p6 = scmp.lt.s32.totalorder %s1231_s25, 5 }
  0x28   : > { %p210_p8 = pnand %p789_p5, %p209_p6 }
  0x29   : > { %s215_s26 = sand.u32 (!%p210_p8), 1, %s1207_s19  }
  0x2a   : > { %213 = sbr.rel (%p210_p8) target bundleno = 453 (0x1c5), region = 36  ;;  %s790_s5 = sshll.u32 (!%p210_p8), %s215_s26, 6 }
  0x2b   : > { %s216_s9 = scalar_lea.sflag (!%p210_p8), [#allocation4], %s215_s26  ;;  %s1374_s10 = scalar_lea.vmem (!%p210_p8), [#allocation3], %s790_s5 }
  0x2f   : > { %1182 = dma.done.wait (%p1338_p7), %s216_s9, 1024  }
  0x30   : > { %1184 = vsyncadd (%p1338_p7), %s216_s9, 4294966272  ;;  %s247_s17 = sand.u32 1, %s1195_s16   ;;  %s792_s20 = sshll.u32 %s1215_s21, 4 }
  0x31   : > { %s791_s28 = sshll.u32 %s247_s17, 6  ;;  %p252_p3 = scmp.lt.s32.totalorder %s792_s20, 31 }
  0x32   : > { %s1389_s14 = scalar_lea.vmem [#allocation6], %s791_s28  ;;  %p794_p9 = scmp.ne.s32.totalorder %s1215_s21, 0 }
  0x33   : > { %s1560_s20 = smov (!%p252_p3, %s792_s20), 31 }
  0x34   : > { %s793_s29 = sshll.u32 %s1560_s20, 2  ;;  %262 = sbr.rel (%p794_p9) target bundleno = 74 (0x4a), region = 44 }
  0x35   : > { %s1387_s13 = scalar_lea.vmem %s1518_s1, %s793_s29 }
  0x39   : > { %vm263_vm0 = vcmask 130048   ;;  %v1236_v0 = vmov 0.0  }
  0x3a   : > { %264 = vst.msk [vmem:[#allocation2] sm:$0xff] %vm263_vm0, %v1236_v0 }
  0x3b   : > { %265 = vst.msk [vmem:[#allocation2 + $0x8] sm:$0xff] %vm263_vm0, %v1236_v0 }
  0x3c   : > { %266 = vst.msk [vmem:[#allocation2 + $0x10] sm:$0xff] %vm263_vm0, %v1236_v0 }
  0x3d   : > { %267 = vst.msk [vmem:[#allocation2 + $0x18] sm:$0xff] %vm263_vm0, %v1236_v0 }
  0x3e   : > { %268 = vst.msk [vmem:[#allocation2 + $0x20] sm:$0xff] %vm263_vm0, %v1236_v0 }
  0x3f   : > { %269 = vst.msk [vmem:[#allocation2 + $0x28] sm:$0xff] %vm263_vm0, %v1236_v0 }
  0x40   : > { %270 = vst.msk [vmem:[#allocation2 + $0x30] sm:$0xff] %vm263_vm0, %v1236_v0 }
  0x41   : > { %271 = vst.msk [vmem:[#allocation2 + $0x38] sm:$0xff] %vm263_vm0, %v1236_v0 }
  0x42   : > { %272 = vst.msk [vmem:[#allocation2 + $0x40] sm:$0xff] %vm263_vm0, %v1236_v0 }
  0x43   : > { %273 = vst.msk [vmem:[#allocation2 + $0x48] sm:$0xff] %vm263_vm0, %v1236_v0 }
  0x44   : > { %274 = vst.msk [vmem:[#allocation2 + $0x50] sm:$0xff] %vm263_vm0, %v1236_v0 }
  0x45   : > { %275 = vst.msk [vmem:[#allocation2 + $0x58] sm:$0xff] %vm263_vm0, %v1236_v0 }
  0x46   : > { %276 = vst.msk [vmem:[#allocation2 + $0x60] sm:$0xff] %vm263_vm0, %v1236_v0 }
  0x47   : > { %277 = vst.msk [vmem:[#allocation2 + $0x68] sm:$0xff] %vm263_vm0, %v1236_v0 }
  0x48   : > { %278 = vst.msk [vmem:[#allocation2 + $0x70] sm:$0xff] %vm263_vm0, %v1236_v0 }
  0x49   : > { %279 = vst.msk [vmem:[#allocation2 + $0x78] sm:$0xff] %vm263_vm0, %v1236_v0 }
  0x4a PF: > { %v893_v1 = vld [vmem:[%s1387_s13 + $0x38] sm:$0xff]  ;;  %v892_v2 = vld [vmem:[%s1387_s13 + $0x30] sm:$0xff]  ;;  %v891_v3 = vld [vmem:[%s1387_s13 + $0x28] sm:$0xff]  ;;  %vm489_vm1 = vcmask 130048   ;;  %p859_p7 = scmp.ne.s32.totalorder %s1215_s21, 1 }
  0x4b   : > { %424 = vmatpush.bf16.msra.mxu0 %v893_v1  ;;  %943 = vmatpush.bf16.msra.mxu1 %v893_v1  ;;  %v890_v4 = vld [vmem:[%s1387_s13 + $0x20] sm:$0xff]  ;;  %v889_v5 = vld [vmem:[%s1387_s13 + $0x18] sm:$0xff]  ;;  %v888_v6 = vld [vmem:[%s1387_s13 + $0x10] sm:$0xff] }
  0x4c   : > { %944 = vmatpush.bf16.msra.mxu2 %v893_v1  ;;  %945 = vmatpush.bf16.msra.mxu3 %v893_v1  ;;  %v887_v7 = vld [vmem:[%s1387_s13 + $0x8] sm:$0xff]  ;;  %v886_v8 = vld [vmem:[%s1387_s13] sm:$0xff]  ;;  %v880_v10 = vld [vmem:[%s1374_s10 + $0x10] sm:$0xff] }
  0x4d   : > { %v878_v9 = vld [vmem:[%s1374_s10] sm:$0xff]  ;;  %v884_v12 = vld [vmem:[%s1374_s10 + $0x30] sm:$0xff]  ;;  %v879_v13 = vld [vmem:[%s1374_s10 + $0x8] sm:$0xff] }
  0x4e   : > { %v882_v11 = vld [vmem:[%s1374_s10 + $0x20] sm:$0xff]  ;;  %v881_v14 = vld [vmem:[%s1374_s10 + $0x18] sm:$0xff]  ;;  %v883_v15 = vld [vmem:[%s1374_s10 + $0x28] sm:$0xff] }
  0x4f   : > { %425 = vmatpush.bf16.msra.mxu0 %v892_v2  ;;  %946 = vmatpush.bf16.msra.mxu1 %v892_v2  ;;  %v885_v16 = vld [vmem:[%s1374_s10 + $0x38] sm:$0xff]  ;;  %v280_v17 = vld [vmem:[#allocation2] sm:$0xff]  ;;  %v281_v25 = vld [vmem:[#allocation2 + $0x8] sm:$0xff] }
  0x50   : > { %947 = vmatpush.bf16.msra.mxu2 %v892_v2  ;;  %948 = vmatpush.bf16.msra.mxu3 %v892_v2  ;;  %v284_v18 = vld [vmem:[#allocation2 + $0x20] sm:$0xff]  ;;  %v285_v26 = vld [vmem:[#allocation2 + $0x28] sm:$0xff]  ;;  %v282_v37 = vld [vmem:[#allocation2 + $0x10] sm:$0xff] }
  0x51   : > { %v288_v23 = vld [vmem:[#allocation2 + $0x40] sm:$0xff]  ;;  %v289_v35 = vld [vmem:[#allocation2 + $0x48] sm:$0xff]  ;;  %v286_v38 = vld [vmem:[#allocation2 + $0x30] sm:$0xff] }
  0x52   : > { %v292_v24 = vld [vmem:[#allocation2 + $0x60] sm:$0xff]  ;;  %v293_v36 = vld [vmem:[#allocation2 + $0x68] sm:$0xff]  ;;  %v290_v47 = vld [vmem:[#allocation2 + $0x50] sm:$0xff] }
  0x53   : > { %426 = vmatpush.bf16.msra.mxu0 %v891_v3  ;;  %949 = vmatpush.bf16.msra.mxu1 %v891_v3  ;;  %v294_v48 = vld [vmem:[#allocation2 + $0x70] sm:$0xff]  ;;  %v283_v49 = vld [vmem:[#allocation2 + $0x18] sm:$0xff] }
  0x54   : > { %950 = vmatpush.bf16.msra.mxu2 %v891_v3  ;;  %951 = vmatpush.bf16.msra.mxu3 %v891_v3  ;;  %v287_v50 = vld [vmem:[#allocation2 + $0x38] sm:$0xff] }
  0x55   : > { %v291_v59 = vld [vmem:[#allocation2 + $0x58] sm:$0xff] }
  0x56   : > { %v295_v60 = vld [vmem:[#allocation2 + $0x78] sm:$0xff] }
  0x57   : > { %427 = vmatpush.bf16.msra.mxu0 %v890_v4  ;;  %952 = vmatpush.bf16.msra.mxu1 %v890_v4 }
  0x58   : > { %953 = vmatpush.bf16.msra.mxu2 %v890_v4  ;;  %954 = vmatpush.bf16.msra.mxu3 %v890_v4 }
  0x5b   : > { %428 = vmatpush.bf16.msra.mxu0 %v889_v5  ;;  %955 = vmatpush.bf16.msra.mxu1 %v889_v5 }
  0x5c   : > { %956 = vmatpush.bf16.msra.mxu2 %v889_v5  ;;  %957 = vmatpush.bf16.msra.mxu3 %v889_v5 }
  0x5f   : > { %429 = vmatpush.bf16.msra.mxu0 %v888_v6  ;;  %958 = vmatpush.bf16.msra.mxu1 %v888_v6 }
  0x60   : > { %959 = vmatpush.bf16.msra.mxu2 %v888_v6  ;;  %960 = vmatpush.bf16.msra.mxu3 %v888_v6 }
  0x63   : > { %430 = vmatpush.bf16.msra.mxu0 %v887_v7  ;;  %961 = vmatpush.bf16.msra.mxu1 %v887_v7 }
  0x64   : > { %962 = vmatpush.bf16.msra.mxu2 %v887_v7  ;;  %963 = vmatpush.bf16.msra.mxu3 %v887_v7 }
  0x67   : > { %431 = vmatpush.bf16.msra.mxu0 %v886_v8  ;;  %964 = vmatpush.bf16.msra.mxu1 %v886_v8 }
  0x68   : > { %965 = vmatpush.bf16.msra.mxu2 %v886_v8  ;;  %966 = vmatpush.bf16.msra.mxu3 %v886_v8 }
  0x6a   : > { %432 = vmatmul.bf16.vlgmr.msra.gmra.mxu0 %v878_v9  ;;  %442 = vmatmul.bf16.vlgmr.msra.gmra.mxu1 %v880_v10 }
  0x6b   : > { %452 = vmatmul.bf16.vlgmr.msra.gmra.mxu2 %v882_v11  ;;  %462 = vmatmul.bf16.vlgmr.msra.gmra.mxu3 %v884_v12 }
  0x7a   : > { %437 = vmatmul.bf16.gmra.mxu0 %v879_v13  ;;  %447 = vmatmul.bf16.gmra.mxu1 %v881_v14 }
  0x7b   : > { %457 = vmatmul.bf16.gmra.mxu2 %v883_v15  ;;  %467 = vmatmul.bf16.gmra.mxu3 %v885_v16 }
  0xe7   : > { %v433_v19 = vpop.f32.mrf.mxu0  ;;  %v443_v20 = vpop.f32.mrf.mxu1 }
  0xe8   : > { %v473_v21 = vadd.f32 %v433_v19, %v280_v17  ;;  %v477_v22 = vadd.f32 %v443_v20, %v284_v18 }
  0xea   : > { %490 = vst.msk [vmem:[#allocation2] sm:$0xff] %vm489_vm1, %v473_v21 }
  0xeb   : > { %494 = vst.msk [vmem:[#allocation2 + $0x20] sm:$0xff] %vm489_vm1, %v477_v22 }
  0xee   : > { %v453_v27 = vpop.f32.mrf.mxu2  ;;  %v463_v28 = vpop.f32.mrf.mxu3 }
  0xef   : > { %v481_v29 = vadd.f32 %v453_v27, %v288_v23  ;;  %v485_v30 = vadd.f32 %v463_v28, %v292_v24  ;;  %v435_v31 = vpop.f32.mrf.mxu0  ;;  %v445_v32 = vpop.f32.mrf.mxu1 }
  0xf0   : > { %v474_v33 = vadd.f32 %v435_v31, %v281_v25  ;;  %v478_v34 = vadd.f32 %v445_v32, %v285_v26 }
  0xf1   : > { %498 = vst.msk [vmem:[#allocation2 + $0x40] sm:$0xff] %vm489_vm1, %v481_v29 }
  0xf2   : > { %502 = vst.msk [vmem:[#allocation2 + $0x60] sm:$0xff] %vm489_vm1, %v485_v30 }
  0xf3   : > { %491 = vst.msk [vmem:[#allocation2 + $0x8] sm:$0xff] %vm489_vm1, %v474_v33 }
  0xf4   : > { %495 = vst.msk [vmem:[#allocation2 + $0x28] sm:$0xff] %vm489_vm1, %v478_v34 }
  0xf6   : > { %v455_v39 = vpop.f32.mrf.mxu2  ;;  %v465_v40 = vpop.f32.mrf.mxu3 }
  0xf7   : > { %v482_v41 = vadd.f32 %v455_v39, %v289_v35  ;;  %v486_v42 = vadd.f32 %v465_v40, %v293_v36  ;;  %v438_v43 = vpop.f32.mrf.mxu0  ;;  %v448_v44 = vpop.f32.mrf.mxu1 }
  0xf8   : > { %v475_v45 = vadd.f32 %v438_v43, %v282_v37  ;;  %v479_v46 = vadd.f32 %v448_v44, %v286_v38 }
  0xf9   : > { %499 = vst.msk [vmem:[#allocation2 + $0x48] sm:$0xff] %vm489_vm1, %v482_v41 }
  0xfa   : > { %503 = vst.msk [vmem:[#allocation2 + $0x68] sm:$0xff] %vm489_vm1, %v486_v42 }
  0xfb   : > { %492 = vst.msk [vmem:[#allocation2 + $0x10] sm:$0xff] %vm489_vm1, %v475_v45 }
  0xfc   : > { %496 = vst.msk [vmem:[#allocation2 + $0x30] sm:$0xff] %vm489_vm1, %v479_v46 }
  0xfe   : > { %v458_v51 = vpop.f32.mrf.mxu2  ;;  %v468_v52 = vpop.f32.mrf.mxu3 }
  0xff   : > { %v483_v53 = vadd.f32 %v458_v51, %v290_v47  ;;  %v487_v54 = vadd.f32 %v468_v52, %v294_v48  ;;  %v440_v55 = vpop.f32.mrf.mxu0  ;;  %v450_v56 = vpop.f32.mrf.mxu1 }
 0x100   : > { %v476_v57 = vadd.f32 %v440_v55, %v283_v49  ;;  %v480_v58 = vadd.f32 %v450_v56, %v287_v50 }
 0x101   : > { %500 = vst.msk [vmem:[#allocation2 + $0x50] sm:$0xff] %vm489_vm1, %v483_v53 }
 0x102   : > { %504 = vst.msk [vmem:[#allocation2 + $0x70] sm:$0xff] %vm489_vm1, %v487_v54 }
 0x103   : > { %493 = vst.msk [vmem:[#allocation2 + $0x18] sm:$0xff] %vm489_vm1, %v476_v57 }
 0x104   : > { %497 = vst.msk [vmem:[#allocation2 + $0x38] sm:$0xff] %vm489_vm1, %v480_v58 }
 0x106   : > { %v460_v61 = vpop.f32.mrf.mxu2  ;;  %v470_v62 = vpop.f32.mrf.mxu3  ;;  %509 = sbr.rel (%p859_p7) target bundleno = 437 (0x1b5), region = 48 }
 0x107   : > { %v484_v63 = vadd.f32 %v460_v61, %v291_v59  ;;  %v488_v0 = vadd.f32 %v470_v62, %v295_v60 }
 0x109   : > { %501 = vst.msk [vmem:[#allocation2 + $0x58] sm:$0xff] %vm489_vm1, %v484_v63 }
 0x10a   : > { %505 = vst.msk [vmem:[#allocation2 + $0x78] sm:$0xff] %vm489_vm1, %v488_v0 }
 0x10b   : > { %v894_v1 = vld [vmem:[%s1519_s2] sm:$0xff]  ;;  %v511_v3 = vld [vmem:[#allocation2 + $0x8] sm:$0xff]  ;;  %v512_v14 = vld [vmem:[#allocation2 + $0x10] sm:$0xff] }
 0x10c   : > { %v510_v2 = vld [vmem:[#allocation2] sm:$0xff]  ;;  %v515_v6 = vld [vmem:[#allocation2 + $0x28] sm:$0xff]  ;;  %577 = vmatpush.bf16.msra.mxu0 %v894_v1  ;;  %967 = vmatpush.bf16.msra.mxu1 %v894_v1  ;;  %v513_v15 = vld [vmem:[#allocation2 + $0x18] sm:$0xff] }
 0x10d   : > { %v526_v4 = vpack.c.bf16 %v511_v3, %v510_v2  ;;  %v514_v5 = vld [vmem:[#allocation2 + $0x20] sm:$0xff]  ;;  %v519_v9 = vld [vmem:[#allocation2 + $0x48] sm:$0xff]  ;;  %968 = vmatpush.bf16.msra.mxu2 %v894_v1  ;;  %969 = vmatpush.bf16.msra.mxu3 %v894_v1  ;;  %v516_v16 = vld [vmem:[#allocation2 + $0x30] sm:$0xff]  ;;  %v527_v22 = vpack.c.bf16 %v513_v15, %v512_v14 }
 0x10e   : > { %v518_v7 = vld [vmem:[#allocation2 + $0x40] sm:$0xff]  ;;  %v528_v8 = vpack.c.bf16 %v515_v6, %v514_v5  ;;  %v523_v11 = vld [vmem:[#allocation2 + $0x68] sm:$0xff]  ;;  %v517_v17 = vld [vmem:[#allocation2 + $0x38] sm:$0xff] }
 0x10f   : > { %v522_v10 = vld [vmem:[#allocation2 + $0x60] sm:$0xff]  ;;  %v530_v12 = vpack.c.bf16 %v519_v9, %v518_v7  ;;  %864 = vmatmul.msk.bf16.vlgmr.msra.gmra.mxu0 %vm489_vm1, %v526_v4  ;;  %v520_v18 = vld [vmem:[#allocation2 + $0x50] sm:$0xff]  ;;  %v529_v23 = vpack.c.bf16 %v517_v17, %v516_v16 }
 0x110   : > { %v532_v13 = vpack.c.bf16 %v523_v11, %v522_v10  ;;  %866 = vmatmul.msk.bf16.vlgmr.msra.gmra.mxu1 %vm489_vm1, %v528_v8  ;;  %v521_v19 = vld [vmem:[#allocation2 + $0x58] sm:$0xff]  ;;  %v524_v20 = vld [vmem:[#allocation2 + $0x70] sm:$0xff]  ;;  %v1078_v28 = vld [vmem:[%s1520_s3] ss:$0 sm:$0xff] }
 0x111   : > { %868 = vmatmul.msk.bf16.vlgmr.msra.gmra.mxu2 %vm489_vm1, %v530_v12  ;;  %v525_v21 = vld [vmem:[#allocation2 + $0x78] sm:$0xff]  ;;  %v531_v24 = vpack.c.bf16 %v521_v19, %v520_v18 }
 0x112   : > { %870 = vmatmul.msk.bf16.vlgmr.msra.gmra.mxu3 %vm489_vm1, %v532_v13  ;;  %v533_v25 = vpack.c.bf16 %v525_v21, %v524_v20 }
 0x11f   : > { %865 = vmatmul.msk.bf16.gmra.mxu0 %vm489_vm1, %v527_v22 }
 0x120   : > { %867 = vmatmul.msk.bf16.gmra.mxu1 %vm489_vm1, %v529_v23 }
 0x121   : > { %869 = vmatmul.msk.bf16.gmra.mxu2 %vm489_vm1, %v531_v24 }
 0x122   : > { %871 = vmatmul.msk.bf16.gmra.mxu3 %vm489_vm1, %v533_v25 }
 0x18c   : > { %v579_v26 = vpop.f32.mrf.mxu0 }
 0x18d   : > { %v589_v27 = vpop.f32.mrf.mxu1  ;;  %v580_v29 = vadd.f32 %v1078_v28, %v579_v26 }
 0x18e   : > { %v590_v30 = vadd.f32 %v1078_v28, %v589_v27 }
 0x18f   : > { %v619_v37 = vmax.f32 %v580_v29, 0.0 }
 0x190   : > { %v623_v38 = vmax.f32 %v590_v30, 0.0 }
 0x194   : > { %v599_v31 = vpop.f32.mrf.mxu2  ;;  %v581_v33 = vpop.f32.mrf.mxu0 }
 0x195   : > { %v609_v32 = vpop.f32.mrf.mxu3  ;;  %v591_v34 = vpop.f32.mrf.mxu1  ;;  %v582_v35 = vadd.f32 %v1078_v28, %v581_v33  ;;  %v600_v43 = vadd.f32 %v1078_v28, %v599_v31 }
 0x196   : > { %v592_v36 = vadd.f32 %v1078_v28, %v591_v34  ;;  %v610_v44 = vadd.f32 %v1078_v28, %v609_v32 }
 0x197   : > { %v620_v39 = vmax.f32 %v582_v35, 0.0  ;;  %v627_v51 = vmax.f32 %v600_v43, 0.0 }
 0x198   : > { %v624_v40 = vmax.f32 %v592_v36, 0.0  ;;  %v631_v52 = vmax.f32 %v610_v44, 0.0 }
 0x199   : > { %v899_v41 = vpack.c.bf16 %v620_v39, %v619_v37 }
 0x19a   : > { %v909_v42 = vpack.c.bf16 %v624_v40, %v623_v38 }
 0x19b   : > { %900 = vst [vmem:[%s1389_s14] sm:$0xff] %v899_v41  }
 0x19c   : > { %v601_v45 = vpop.f32.mrf.mxu2  ;;  %937 = vst [vmem:[%s1389_s14 + $0x10] sm:$0xff] %v909_v42   ;;  %v584_v49 = vpop.f32.mrf.mxu0 }
 0x19d   : > { %v611_v46 = vpop.f32.mrf.mxu3  ;;  %v602_v47 = vadd.f32 %v1078_v28, %v601_v45  ;;  %v594_v50 = vpop.f32.mrf.mxu1  ;;  %v585_v57 = vadd.f32 %v1078_v28, %v584_v49 }
 0x19e   : > { %v612_v48 = vadd.f32 %v1078_v28, %v611_v46  ;;  %v595_v58 = vadd.f32 %v1078_v28, %v594_v50 }
 0x19f   : > { %v628_v53 = vmax.f32 %v602_v47, 0.0  ;;  %v621_v1 = vmax.f32 %v585_v57, 0.0 }
 0x1a0   : > { %v632_v54 = vmax.f32 %v612_v48, 0.0  ;;  %v625_v2 = vmax.f32 %v595_v58, 0.0 }
 0x1a1   : > { %v919_v55 = vpack.c.bf16 %v628_v53, %v627_v51 }
 0x1a2   : > { %v929_v56 = vpack.c.bf16 %v632_v54, %v631_v52 }
 0x1a3   : > { %939 = vst [vmem:[%s1389_s14 + $0x20] sm:$0xff] %v919_v55  }
 0x1a4   : > { %941 = vst [vmem:[%s1389_s14 + $0x30] sm:$0xff] %v929_v56   ;;  %v604_v59 = vpop.f32.mrf.mxu2  ;;  %v586_v61 = vpop.f32.mrf.mxu0 }
 0x1a5   : > { %v614_v60 = vpop.f32.mrf.mxu3  ;;  %v596_v62 = vpop.f32.mrf.mxu1  ;;  %v587_v63 = vadd.f32 %v1078_v28, %v586_v61  ;;  %v605_v7 = vadd.f32 %v1078_v28, %v604_v59 }
 0x1a6   : > { %v597_v0 = vadd.f32 %v1078_v28, %v596_v62  ;;  %v615_v8 = vadd.f32 %v1078_v28, %v614_v60 }
 0x1a7   : > { %v622_v3 = vmax.f32 %v587_v63, 0.0  ;;  %v629_v13 = vmax.f32 %v605_v7, 0.0 }
 0x1a8   : > { %v626_v4 = vmax.f32 %v597_v0, 0.0  ;;  %v633_v14 = vmax.f32 %v615_v8, 0.0 }
 0x1a9   : > { %v904_v5 = vpack.c.bf16 %v622_v3, %v621_v1 }
 0x1aa   : > { %v914_v6 = vpack.c.bf16 %v626_v4, %v625_v2 }
 0x1ab   : > { %936 = vst [vmem:[%s1389_s14 + $0x8] sm:$0xff] %v904_v5  }
 0x1ac   : > { %v606_v9 = vpop.f32.mrf.mxu2  ;;  %938 = vst [vmem:[%s1389_s14 + $0x18] sm:$0xff] %v914_v6  }
 0x1ad   : > { %v616_v10 = vpop.f32.mrf.mxu3  ;;  %v607_v11 = vadd.f32 %v1078_v28, %v606_v9 }
 0x1ae   : > { %v617_v12 = vadd.f32 %v1078_v28, %v616_v10 }
 0x1af   : > { %v630_v15 = vmax.f32 %v607_v11, 0.0 }
 0x1b0   : > { %v634_v16 = vmax.f32 %v617_v12, 0.0 }
 0x1b1   : > { %v924_v17 = vpack.c.bf16 %v630_v15, %v629_v13 }
 0x1b2   : > { %v934_v18 = vpack.c.bf16 %v634_v16, %v633_v14 }
 0x1b3   : > { %940 = vst [vmem:[%s1389_s14 + $0x28] sm:$0xff] %v924_v17  }
 0x1b4   : > { %942 = vst [vmem:[%s1389_s14 + $0x38] sm:$0xff] %v934_v18  }
 0x1b5 PF: > { %s895_s30 = sshll.u32 %s1219_s22, 6  ;;  %s680_s9 = sshll.u32 %s1389_s14, 4  ;;  %s681_s9 = int_to_ptr.vmem [resolvable:$true] %s680_s9 }
 0x1b6   : > { %s679_s5 = scalar_lea.hbm %s1521_s4, %s895_s30  ;;  %s668_s20 = scalar_lea.sflag [#allocation5], %s247_s17 }
 0x1b7   : > { %s682_s10 = sshll.u32 %s679_s5, 4  ;;  %s1129_s22 = scalar_lea.hbm %s1521_s4, 128  ;;  %s683_s10 = int_to_ptr.hbm [resolvable:$true] %s682_s10 }
 0x1b8   : > { %s1123_s28 = sshra.s32 %s683_s10, 4  ;;  %s1124_s28 = int_to_ptr.hbm [resolvable:$true] %s1123_s28 }
 0x1b9   : > { %s1125_s29 = scalar_lea.hbm %s1124_s28, 64  ;;  %p1130_p0 = scmp.lt.s32.totalorder %s1124_s28, %s1521_s4 }
 0x1ba   : > { %p1126_p10 = scmp.ne.s32.totalorder %s1124_s28, %s1125_s29  ;;  %p1131_p1 = scmp.lt.s32.totalorder %s1129_s22, %s1125_s29 }
 0x1bc   : > { %p1127_p11 = pnand %p1126_p10, %p1346_p12  ;;  %p1132_p4 = por %p1131_p1, %p1130_p0 }
 0x1be   : > { %p1128_p13 = pneg %p1127_p11 }
 0x1c0   : > { %p1133_p5 = pnand %p1132_p4, %p1128_p13 }
 0x1c2   : > { %1136 = shalt.err (!%p1133_p5)
}
 0x1c3   : > { %s1237_s17 = smov 64   ;;  %s1238_s14 = smov 4  }
 0x1c4   : > { %972 = dma.vmem_to_hbm [thread:$0]  (%p1346_p12), %s681_s9, 1024, %s683_s10, %s668_s20, %s1237_s17, %s1237_s17, %s1238_s14  }
 0x1c5 PF: > { %p983_p6 = scmp.ge.s32.totalorder %s1231_s25, 2  ;;  %s697_s21 = sand.u32 1, %s1191_s15  }
 0x1c6   : > { %s698_s7 = scalar_lea.sflag [#allocation5], %s697_s21 }
 0x1c7   : > { %p979_p8 = pnand %p983_p6, %p1359_p2 }
 0x1c9   : > { %p980_p3 = pneg %p979_p8 }
 0x1cb   : > { %1186 = dma.done.wait (%p980_p3), %s698_s7, 1024  }
 0x1cc   : > { %1188 = vsyncadd (%p980_p3), %s698_s7, 4294966272  ;;  %s20_s25 = sadd.s32 1, %s1231_s25   ;;  %s1539_s30 = sld [smem:[#allocation9_spill]] }
 0x1cd   : > { %p17_p9 = scmp.ge.s32.totalorder %s20_s25, 6   ;;  %s1540_s17 = sld [smem:[#allocation13_spill]] }
 0x1ce   : > { %s1541_s11 = sld [smem:[#allocation10_spill]]  ;;  %s1545_s15 = smov %s1195_s16 }
 0x1cf   : > { %s1542_s20 = sld [smem:[#allocation14_spill]]  ;;  %s1547_s18 = smov %s1207_s19 }
 0x1d0   : > { %s1543_s27 = sld [smem:[#allocation11_spill]]  ;;  %s1549_s21 = smov %s1223_s23 }
 0x1d1   : > { %s1544_s26 = sld [smem:[#allocation12_spill]]  ;;  %s1550_s22 = smov %s1227_s24 }
 0x1d2   : > { %s1546_s16 = smov %s1539_s30 }
 0x1d3   :  { %19 = sbr.rel (!%p17_p9) target bundleno = 9 (0x9), region = 92 }
 0x1d4   : > { %s1548_s19 = smov %s1541_s11 }
 0x1d6   : > { %s1551_s23 = smov %s1543_s27 }
 0x1d7   : > { %s1552_s24 = smov %s1544_s26 }
 0x1d8   :  { %704 = vsyncpa [#allocation4], 1 }
 0x1d9   :  { %706 = vsyncpa [#allocation4 + $0x1], 1 }
 0x1da   :  { %707 = vsyncpa [#allocation5], 1 }
 0x1db   :  { %709 = vsyncpa [#allocation5 + $0x1], 1 }

</bundles_post_ra>
